<compile_context>
chip_gen: v6e
topology: v6e:2x2x1
jax: 0.10.0
libtpu: 0.0.40
codegen_flags: <defaults>
</compile_context>

<pallas_src>
import jax
import jax.numpy as jnp
from jax.experimental import pallas as pl
from jax.experimental.pallas import tpu as pltpu


def _vector_attention_kernel(x_ref, v_ref, o_ref):
    # x_ref / o_ref: (TILE_R, LANES) tile; v_ref: (1, LANES) resident vector.
    # Single VPU multiply with a sublane broadcast of the vector row.
    o_ref[...] = x_ref[...] * v_ref[...]


def _choose_lanes(total, d):
    """Widest lane-dense last dim (multiple of 128) that folds whole D-periods."""
    for lanes in (1024, 512, 256, 128):
        if lanes % d == 0 and total % lanes == 0:
            return lanes
    return None


def vector_attention(x, attention_vector):
    """x: (..., D) float, attention_vector: (D,) float. Returns x * v."""
    orig_shape = x.shape
    d = orig_shape[-1]
    total = x.size
    itemsize = jnp.dtype(x.dtype).itemsize

    lanes = _choose_lanes(total, d)
    if lanes is not None:
        # Lane-dense layout: fold (lanes // d) attention-vector periods per row.
        rows = total // lanes
        x2d = x.reshape(rows, lanes)
        v2d = jnp.tile(attention_vector, lanes // d).reshape(1, lanes).astype(x.dtype)
    else:
        # Fallback: (B*S, D) layout, full-extent last dim (legal even if D%128 != 0).
        rows = total // d
        lanes = d
        x2d = x.reshape(rows, lanes)
        v2d = attention_vector.reshape(1, lanes).astype(x.dtype)

    # Row tile sized to ~1 MiB: big enough to sit at the HBM roofline,
    # small enough that 2x double-buffered input + output tiles fit every
    # generation's scoped VMEM default (v5e 16 MiB, v6e 32 MiB, v7x 32 MiB).
    target_tile_bytes = 1 << 20
    bytes_per_row = lanes * itemsize
    tile_r = max(8, (target_tile_bytes // bytes_per_row) // 8 * 8)
    if rows <= tile_r:
        tile_r = rows  # full extent -> always layout-legal, grid of 1
    grid_r = pl.cdiv(rows, tile_r)

    out2d = pl.pallas_call(
        _vector_attention_kernel,
        out_shape=jax.ShapeDtypeStruct((rows, lanes), x.dtype),
        grid_spec=pltpu.PrefetchScalarGridSpec(
            num_scalar_prefetch=0,
            grid=(grid_r,),
            in_specs=[
                pl.BlockSpec((tile_r, lanes), lambda r: (r, 0)),  # streaming x tiles
                pl.BlockSpec((1, lanes), lambda r: (0, 0)),       # resident vector
            ],
            out_specs=pl.BlockSpec((tile_r, lanes), lambda r: (r, 0)),
        ),
        compiler_params=pltpu.CompilerParams(
            dimension_semantics=("parallel",),
        ),
    )(x2d, v2d)

    return out2d.reshape(orig_shape)


if __name__ == "__main__":
    key = jax.random.PRNGKey(0)
    kx, kv, kx2, kv2 = jax.random.split(key, 4)

    # Primary case: matches the module spec (input_size = 32), small shapes.
    B, S, D = 2, 8, 32
    x = jax.random.normal(kx, (B, S, D), dtype=jnp.float32)
    attention_vector = jax.random.normal(kv, (D,), dtype=jnp.float32)  # randn init

    out = vector_attention(x, attention_vector)
    out = jax.block_until_ready(out)

    ref = x * attention_vector
    assert out.shape == x.shape
    assert jnp.allclose(out, ref, atol=1e-6, rtol=1e-6)

    # Secondary case: D does not divide 128 -> exercises the fallback layout.
    B2, S2, D2 = 2, 8, 24
    x2 = jax.random.normal(kx2, (B2, S2, D2), dtype=jnp.float32)
    v2 = jax.random.normal(kv2, (D2,), dtype=jnp.float32)
    out2 = jax.block_until_ready(vector_attention(x2, v2))
    assert jnp.allclose(out2, x2 * v2, atol=1e-6, rtol=1e-6)

    print("KERNEL_OK")
</pallas_src>

<mosaic_0001>
module attributes {stable_mosaic.version = 11 : i64} {
  func.func @_vector_attention_kernel(%arg0: i32, %arg1: memref<1x512xf32, #tpu.memory_space<vmem>>, %arg2: memref<1x512xf32, #tpu.memory_space<vmem>>, %arg3: memref<1x512xf32, #tpu.memory_space<vmem>>) attributes {dimension_semantics = [#tpu.dimension_semantics<parallel>], iteration_bounds = array<i64: 1>, scalar_prefetch = 0 : i64, scratch_operands = 0 : i64, tpu.core_type = #tpu.core_type<tc>, window_params = [{transform_indices = @transform_0, window_bounds = array<i64: 1, 512>}, {pipeline_mode = #tpu.pipeline_mode<synchronous>, transform_indices = @transform_1, window_bounds = array<i64: 1, 512>}, {transform_indices = @transform_2, window_bounds = array<i64: 1, 512>}]} {
    %c0 = arith.constant 0 : index
    %c0_0 = arith.constant 0 : index
    %0 = vector.load %arg1[%c0, %c0_0] : memref<1x512xf32, #tpu.memory_space<vmem>>, vector<1x512xf32>
    %c0_1 = arith.constant 0 : index
    %c0_2 = arith.constant 0 : index
    %1 = vector.load %arg2[%c0_1, %c0_2] : memref<1x512xf32, #tpu.memory_space<vmem>>, vector<1x512xf32>
    %2 = arith.mulf %0, %1 : vector<1x512xf32>
    %c0_3 = arith.constant 0 : index
    %c0_4 = arith.constant 0 : index
    %3 = vector.load %arg3[%c0_3, %c0_4] : memref<1x512xf32, #tpu.memory_space<vmem>>, vector<1x512xf32>
    tpu.vector_store %arg3[%c0_3, %c0_4], %2 {strides = array<i32>} : memref<1x512xf32, #tpu.memory_space<vmem>>, vector<1x512xf32>,
    return
  }
  func.func @transform_0(%arg0: i32) -> (i32, i32) {
    %c0_i32 = arith.constant 0 : i32
    %c0_i32_0 = arith.constant 0 : i32
    return %arg0, %c0_i32 : i32, i32
  }
  func.func @transform_1(%arg0: i32) -> (i32, i32) {
    %c0_i32 = arith.constant 0 : i32
    %c0_i32_0 = arith.constant 0 : i32
    %c0_i32_1 = arith.constant 0 : i32
    return %c0_i32, %c0_i32_0 : i32, i32
  }
  func.func @transform_2(%arg0: i32) -> (i32, i32) {
    %c0_i32 = arith.constant 0 : i32
    %c0_i32_0 = arith.constant 0 : i32
    return %arg0, %c0_i32 : i32, i32
  }
}

</mosaic_0001>

<bundles_post_ra>
// kernel: tpu_custom_call.1
= control target key start
LH: loop header
LB: loop body
LE: loop exit
PB: predicated region body
PF: predicated region fallthrough
CT: control target
= control target key end

     0   :  { %7 = vsyncpa [#allocation3], 0  ;;  %s156_s0 = inlined_call_operand.hbm [shape: f32[1,512], index: 0, kind: input, shape index: {}]   ;;  %s157_s1 = inlined_call_operand.hbm [shape: f32[1,512], index: 1, kind: input, shape index: {}]   ;;  %s158_s2 = inlined_call_operand.hbm [shape: f32[1,512], index: 2, kind: output, shape index: {}]  }
   0x1   :  { %8 = vsyncpa [#allocation6], 0 }
   0x2   :  { %9 = vsyncpa [#allocation4], 0  ;;  %s129_s9 = smov [#allocation2]   ;;  %s130_s11 = smov [#allocation5]  }
   0x3   :  { %s16_s10 = sshll.u32 %s129_s9, 4  ;;  %s26_s12 = sshll.u32 %s130_s11, 4  ;;  %s17_s10 = int_to_ptr.vmem [resolvable:$true] %s16_s10  ;;  %s27_s12 = int_to_ptr.vmem [resolvable:$true] %s26_s12 }
   0x4   :  { %s71_s13 = scalar_lea.vmem %s17_s10, 64  ;;  %p76_p1 = scmp.lt.s32.totalorder %s17_s10, %s17_s10 }
   0x5   :  { %p72_p0 = scmp.ne.s32.totalorder %s17_s10, %s71_s13  ;;  %p77_p2 = scmp.lt.s32.totalorder %s71_s13, %s71_s13 }
   0x7   :  { %p78_p3 = por %p77_p2, %p76_p1 }
   0x9   :  { %p79_p4 = pnand %p78_p3, %p72_p0 }
   0xb   :  { %82 = shalt.err (!%p79_p4)
}
   0xc   :  { %19 = dma.hbm_to_vmem [thread:$0]  %s156_s0, 64, %s17_s10, [#allocation3]  }
   0xd   :  { %s91_s16 = scalar_lea.vmem %s27_s12, 64  ;;  %p96_p6 = scmp.lt.s32.totalorder %s27_s12, %s27_s12 }
   0xe   :  { %p92_p5 = scmp.ne.s32.totalorder %s27_s12, %s91_s16  ;;  %p97_p7 = scmp.lt.s32.totalorder %s91_s16, %s91_s16 }
  0x10   :  { %p98_p8 = por %p97_p7, %p96_p6 }
  0x12   :  { %p99_p9 = pnand %p98_p8, %p92_p5 }
  0x14   :  { %102 = shalt.err (!%p99_p9)
}
  0x15   :  { %29 = dma.hbm_to_vmem [thread:$0]  %s157_s1, 64, %s27_s12, [#allocation6]  }
  0x16   :  { %123 = dma.done.wait [#allocation3], 64  }
  0x17   :  { %124 = vsyncadd [#allocation3], 4294967232 }
  0x18   :  { %125 = dma.done.wait [#allocation6], 64  }
  0x19   :  { %126 = vsyncadd [#allocation6], 4294967232  ;;  %v39_v0 = vlaneseq  ;;  %s131_s19 = smov [#allocation7]   ;;  %v36_v1 = vld [vmem:[#allocation2] sm:$0xf] }
  0x1a   :  { %s50_s20 = sshll.u32 %s131_s19, 4  ;;  %v37_v2 = vld [vmem:[#allocation5] sm:$0xf]  ;;  %s51_s20 = int_to_ptr.vmem [resolvable:$true] %s50_s20 }
  0x1b   :  { %vm41_vm0 = vcmp.lt.s32.totalorder %v39_v0, 512  ;;  %v38_v3 = vmul.f32 %v37_v2, %v36_v1  ;;  %s103_s0 = scalar_lea.vmem %s51_s20, 64  ;;  %p108_p11 = scmp.lt.s32.totalorder %s51_s20, %s51_s20 }
  0x1c   :  { %p104_p10 = scmp.ne.s32.totalorder %s51_s20, %s103_s0  ;;  %p109_p12 = scmp.lt.s32.totalorder %s103_s0, %s103_s0 }
  0x1d   :  { %43 = vst.msk [vmem:[#allocation7] sm:$0xf] %vm41_vm0, %v38_v3 }
  0x1e   :  { %p110_p13 = por %p109_p12, %p108_p11 }
  0x20   :  { %p111_p0 = pnand %p110_p13, %p104_p10 }
  0x22   :  { %114 = shalt.err (!%p111_p0)
}
  0x23   :  { %53 = dma.vmem_to_hbm [thread:$0]  %s51_s20, 64, %s158_s2, [#allocation4]  }
  0x24   :  { %127 = dma.done.wait [#allocation4], 64  }
  0x25   :  { %128 = vsyncadd [#allocation4], 4294967232 }
  0x26   :  { %57 = vsyncpa [#allocation3], 1 }
  0x27   :  { %58 = vsyncpa [#allocation6], 1 }
  0x28   :  { %59 = vsyncpa [#allocation4], 1 }

</bundles_post_ra>
